<compile_context>
chip_gen: v7x
topology: tpu7x:2x2x1
jax: 0.10.0
libtpu: 0.0.40
codegen_flags: <defaults>
</compile_context>

<pallas_src>
import jax
import jax.numpy as jnp
import numpy as np
from jax.experimental import pallas as pl
from jax.experimental.pallas import tpu as pltpu


def dcg_loss_kernel(y_ref, x_ref, v_ref, w_ref, gb_ref, out_ref, xv_scratch):
    # y_ref      : (B, 1)   i32  VMEM   class labels (column)
    # x_ref      : (B, D)   f32  VMEM   flattened x
    # v_ref      : (B, D)   f32  VMEM   raw (unnormalized) direction v
    # w_ref      : (D, C)   f32  VMEM   classifier weight
    # gb_ref     : (C+1, C) f32  VMEM   rows [0:C) = W^T W (Gram), row C = bias
    # out_ref    : (1, 1)   f32  VMEM   scalar loss
    # xv_scratch : (2B, D)  f32  VMEM   stacked [x; v] for one MXU matmul
    B, D = x_ref.shape
    C = w_ref.shape[1]

    gb = gb_ref[...]
    gram = gb[:C, :]           # (C, C)   static slice
    bias = gb[C:C + 1, :]      # (1, C)

    # Stack x and v in VMEM (two local copies) -> ONE MXU matmul / weight push.
    xv_scratch[pl.ds(0, B), :] = x_ref[...]
    xv_scratch[pl.ds(B, B), :] = v_ref[...]
    z = jnp.dot(xv_scratch[...], w_ref[...],
                preferred_element_type=jnp.float32)            # (2B, C)
    logits = z[:B, :] + bias                                   # (B, C)
    u_raw = z[B:, :]                                           # (B, C)

    # Stable softmax (VPU/EUP; C = 16 lanes only).
    m = jnp.max(logits, axis=1, keepdims=True)
    e = jnp.exp(logits - m)
    p = e / jnp.sum(e, axis=1, keepdims=True)                  # (B, C)

    # One-hot(y) with a single vectorized compare (no per-row loop).
    c_iota = jax.lax.broadcasted_iota(jnp.int32, (B, C), 1)
    onehot = (c_iota == y_ref[...]).astype(jnp.float32)        # (B, C)

    # loss1 = mean_i ||grad1_i||  with  ||grad1_i||^2 = a_i (W^T W) a_i^T.
    a = onehot - p                                             # (B, C)
    q = jnp.dot(a, gram, preferred_element_type=jnp.float32)   # (B, C)
    norm2 = jnp.sum(a * q, axis=1, keepdims=True)              # (B, 1)
    loss1 = jnp.sum(jnp.sqrt(jnp.maximum(norm2, 0.0)),
                    axis=0, keepdims=True) * (1.0 / B)         # (1, 1)

    # Directional second-order term with v = v_raw / ||v_raw||:
    #   u = (v_raw W) * rsqrt(||v_raw||^2)   (rsqrt -> EUP slot)
    # ||v_raw||^2 computed only over the v rows (not the stacked operand).
    v_sq = jnp.sum(v_ref[...] * v_ref[...], axis=1, keepdims=True)   # (B, 1)
    inv_vnorm = jax.lax.rsqrt(v_sq)                                  # (B, 1)
    u = u_raw * inv_vnorm                                            # (B, C)
    s = jnp.sum(p * u, axis=1, keepdims=True)                        # (B, 1)
    g2vv = s * s - jnp.sum(p * u * u, axis=1, keepdims=True)         # (B, 1)
    loss2 = jnp.sum(g2vv, axis=0, keepdims=True) * (1.0 / B)         # (1, 1)

    out_ref[...] = loss1 + 2.0 * loss2


def make_dcg_constants(w, bias):
    """Per-model constants, computed ONCE at setup time (not per loss call).

    Gram matrix W^T W lets the kernel compute ||grad1|| without a transposed
    dot or a (B, D) intermediate; it is fused with the bias row into one tiny
    (C+1, C) tile so both travel as one DMA.  HIGHEST precision protects the
    cancellation-sensitive a.G.a^T quadratic form.
    """
    C = w.shape[1]
    gram = jnp.dot(w.T, w, precision=jax.lax.Precision.HIGHEST)      # (C, C)
    return jnp.concatenate([gram, bias.reshape(1, C)], axis=0)       # (C+1, C)


@jax.jit
def dcg_loss_pallas(x_flat, y2d, v_raw, w, gb):
    B, D = x_flat.shape
    C = w.shape[1]

    vmem = pltpu.MemorySpace.VMEM
    out = pl.pallas_call(
        dcg_loss_kernel,
        out_shape=jax.ShapeDtypeStruct((1, 1), jnp.float32),
        in_specs=[
            pl.BlockSpec(memory_space=vmem),   # y2d (B, 1)   int32 labels
            pl.BlockSpec(memory_space=vmem),   # x   (B, D)
            pl.BlockSpec(memory_space=vmem),   # v   (B, D)
            pl.BlockSpec(memory_space=vmem),   # w   (D, C)
            pl.BlockSpec(memory_space=vmem),   # gb  (C+1, C)
        ],
        out_specs=pl.BlockSpec(memory_space=vmem),
        scratch_shapes=[pltpu.VMEM((2 * B, D), jnp.float32)],
    )(y2d, x_flat, v_raw, w, gb)
    return out[0, 0]


def dcg_loss_reference(x_flat, y, w, bias, v_raw):
    """Pure-JAX reference using autodiff, mirroring the PyTorch code."""
    b = x_flat.shape[0]

    def logp_sum(xf):
        logits = xf @ w + bias
        lp = logits[jnp.arange(b), y] - jax.scipy.special.logsumexp(logits, axis=1)
        return jnp.sum(lp)

    g1 = jax.grad(logp_sum)(x_flat)                            # (B, D)
    loss1 = jnp.mean(jnp.linalg.norm(g1, axis=1))

    v = v_raw / jnp.linalg.norm(v_raw, axis=-1, keepdims=True)

    def g1v_sum(xf):
        g = jax.grad(logp_sum)(xf)
        return jnp.sum(jnp.sum(v * g, axis=1))

    g2 = jax.grad(g1v_sum)(x_flat)                             # (B, D)
    loss2 = jnp.mean(jnp.sum(v * g2, axis=1))
    return loss1 + 2.0 * loss2


if __name__ == "__main__":
    B, CH, H, W = 2, 4, 16, 16           # NCHW, as in the PyTorch module
    D = CH * H * W                        # 1024 (multiple of 128 -> lane-friendly)
    NUM_CLASSES = 16

    key = jax.random.PRNGKey(0)
    kx, ky, kw, kb, kv = jax.random.split(key, 5)

    x = jax.random.normal(kx, (B, CH, H, W), dtype=jnp.float32)
    y = jax.random.randint(ky, (B,), 0, NUM_CLASSES, dtype=jnp.int32)
    w = jax.random.normal(kw, (D, NUM_CLASSES), dtype=jnp.float32) * 0.05
    bias = jax.random.normal(kb, (1, NUM_CLASSES), dtype=jnp.float32) * 0.01
    # torch.rand_like -> uniform [0, 1); normalization is folded into the kernel.
    v_raw = jax.random.uniform(kv, (B, D), dtype=jnp.float32)

    x_flat = x.reshape(B, -1)             # matches self.x.view(b, -1)
    y2d = y.reshape(B, 1).astype(jnp.int32)

    # Per-model constant, computed once at setup (not per call).
    gb = make_dcg_constants(w, bias)      # (C+1, C)

    loss = dcg_loss_pallas(x_flat, y2d, v_raw, w, gb)
    jax.block_until_ready(loss)

    ref = dcg_loss_reference(x_flat, y, w, bias, v_raw)
    np.testing.assert_allclose(np.asarray(loss), np.asarray(ref), rtol=1e-3, atol=1e-4)

    print("KERNEL_OK")
</pallas_src>

<mosaic_0001>
module attributes {stable_mosaic.version = 11 : i64} {
  func.func @dcg_loss_kernel(%arg0: memref<2x1xi32, #tpu.memory_space<vmem>>, %arg1: memref<2x1024xf32, #tpu.memory_space<vmem>>, %arg2: memref<2x1024xf32, #tpu.memory_space<vmem>>, %arg3: memref<1024x16xf32, #tpu.memory_space<vmem>>, %arg4: memref<17x16xf32, #tpu.memory_space<vmem>>, %arg5: memref<1x1xf32, #tpu.memory_space<vmem>>, %arg6: memref<4x1024xf32, #tpu.memory_space<vmem>>) attributes {dimension_semantics = [], scalar_prefetch = 0 : i64, scratch_operands = 1 : i64, tpu.core_type = #tpu.core_type<tc>} {
    %c0 = arith.constant 0 : index
    %c0_0 = arith.constant 0 : index
    %0 = vector.load %arg4[%c0, %c0_0] : memref<17x16xf32, #tpu.memory_space<vmem>>, vector<17x16xf32>
    %1 = vector.extract_strided_slice %0 {offsets = [0, 0], sizes = [16, 16], strides = [1, 1]} : vector<17x16xf32> to vector<16x16xf32>
    %2 = vector.extract_strided_slice %0 {offsets = [16, 0], sizes = [1, 16], strides = [1, 1]} : vector<17x16xf32> to vector<1x16xf32>
    %c0_1 = arith.constant 0 : index
    %c0_2 = arith.constant 0 : index
    %3 = vector.load %arg1[%c0_1, %c0_2] : memref<2x1024xf32, #tpu.memory_space<vmem>>, vector<2x1024xf32>
    %c0_3 = arith.constant 0 : index
    %c0_4 = arith.constant 0 : index
    %4 = vector.load %arg6[%c0_3, %c0_4] : memref<4x1024xf32, #tpu.memory_space<vmem>>, vector<2x1024xf32>
    tpu.vector_store %arg6[%c0_3, %c0_4], %3 {strides = array<i32>} : memref<4x1024xf32, #tpu.memory_space<vmem>>, vector<2x1024xf32>,
    %c0_5 = arith.constant 0 : index
    %c0_6 = arith.constant 0 : index
    %5 = vector.load %arg2[%c0_5, %c0_6] : memref<2x1024xf32, #tpu.memory_space<vmem>>, vector<2x1024xf32>
    %c2 = arith.constant 2 : index
    %c0_7 = arith.constant 0 : index
    %6 = vector.load %arg6[%c2, %c0_7] : memref<4x1024xf32, #tpu.memory_space<vmem>>, vector<2x1024xf32>
    tpu.vector_store %arg6[%c2, %c0_7], %5 {strides = array<i32>} : memref<4x1024xf32, #tpu.memory_space<vmem>>, vector<2x1024xf32>,
    %c0_8 = arith.constant 0 : index
    %c0_9 = arith.constant 0 : index
    %7 = vector.load %arg6[%c0_8, %c0_9] : memref<4x1024xf32, #tpu.memory_space<vmem>>, vector<4x1024xf32>
    %c0_10 = arith.constant 0 : index
    %c0_11 = arith.constant 0 : index
    %8 = vector.load %arg3[%c0_10, %c0_11] : memref<1024x16xf32, #tpu.memory_space<vmem>>, vector<1024x16xf32>
    %cst = arith.constant dense<0.000000e+00> : vector<4x16xf32>
    %9 = tpu.matmul %7, %8, %cst {dimension_numbers = #tpu.dot_dimension_numbers<[1], [0], [0], [1], [0, 0, 1, 1], [], []>} : vector<4x1024xf32>, vector<1024x16xf32>, vector<4x16xf32> -> vector<4x16xf32>
    %10 = vector.extract_strided_slice %9 {offsets = [0, 0], sizes = [2, 16], strides = [1, 1]} : vector<4x16xf32> to vector<2x16xf32>
    %11 = vector.broadcast %2 : vector<1x16xf32> to vector<2x16xf32>
    %12 = arith.addf %10, %11 : vector<2x16xf32>
    %13 = vector.extract_strided_slice %9 {offsets = [2, 0], sizes = [2, 16], strides = [1, 1]} : vector<4x16xf32> to vector<2x16xf32>
    %cst_12 = arith.constant dense<0xFF800000> : vector<2xf32>
    %14 = vector.multi_reduction <maximumf>, %12, %cst_12 [1] : vector<2x16xf32> to vector<2xf32>
    %15 = vector.shape_cast %14 : vector<2xf32> to vector<2x1xf32>
    %16 = vector.broadcast %15 : vector<2x1xf32> to vector<2x16xf32>
    %17 = arith.subf %12, %16 : vector<2x16xf32>
    %18 = math.exp %17 : vector<2x16xf32>
    %cst_13 = arith.constant dense<0.000000e+00> : vector<2xf32>
    %19 = vector.multi_reduction <add>, %18, %cst_13 [1] : vector<2x16xf32> to vector<2xf32>
    %20 = vector.shape_cast %19 : vector<2xf32> to vector<2x1xf32>
    %21 = vector.broadcast %20 : vector<2x1xf32> to vector<2x16xf32>
    %22 = arith.divf %18, %21 : vector<2x16xf32>
    %23 = tpu.iota {dimensions = array<i32: 1>} : vector<2x16xi32>
    %c0_14 = arith.constant 0 : index
    %c0_15 = arith.constant 0 : index
    %24 = vector.load %arg0[%c0_14, %c0_15] : memref<2x1xi32, #tpu.memory_space<vmem>>, vector<2x1xi32>
    %25 = vector.broadcast %24 : vector<2x1xi32> to vector<2x16xi32>
    %26 = arith.cmpi eq, %23, %25 : vector<2x16xi32>
    %27 = arith.extui %26 : vector<2x16xi1> to vector<2x16xi32>
    %28 = arith.sitofp %27 : vector<2x16xi32> to vector<2x16xf32>
    %29 = arith.subf %28, %22 : vector<2x16xf32>
    %cst_16 = arith.constant dense<0.000000e+00> : vector<2x16xf32>
    %30 = tpu.matmul %29, %1, %cst_16 {dimension_numbers = #tpu.dot_dimension_numbers<[1], [0], [0], [1], [0, 0, 1, 1], [], []>} : vector<2x16xf32>, vector<16x16xf32>, vector<2x16xf32> -> vector<2x16xf32>
    %31 = arith.mulf %29, %30 : vector<2x16xf32>
    %cst_17 = arith.constant dense<0.000000e+00> : vector<2xf32>
    %32 = vector.multi_reduction <add>, %31, %cst_17 [1] : vector<2x16xf32> to vector<2xf32>
    %33 = vector.shape_cast %32 : vector<2xf32> to vector<2x1xf32>
    %cst_18 = arith.constant 0.000000e+00 : f32
    %34 = vector.broadcast %cst_18 : f32 to vector<2x1xf32>
    %35 = arith.maximumf %33, %34 : vector<2x1xf32>
    %36 = math.sqrt %35 : vector<2x1xf32>
    %cst_19 = arith.constant dense<0.000000e+00> : vector<1xf32>
    %37 = vector.multi_reduction <add>, %36, %cst_19 [0] : vector<2x1xf32> to vector<1xf32>
    %38 = vector.shape_cast %37 : vector<1xf32> to vector<1x1xf32>
    %cst_20 = arith.constant 5.000000e-01 : f32
    %39 = vector.broadcast %cst_20 : f32 to vector<1x1xf32>
    %40 = arith.mulf %38, %39 : vector<1x1xf32>
    %c0_21 = arith.constant 0 : index
    %c0_22 = arith.constant 0 : index
    %41 = vector.load %arg2[%c0_21, %c0_22] : memref<2x1024xf32, #tpu.memory_space<vmem>>, vector<2x1024xf32>
    %c0_23 = arith.constant 0 : index
    %c0_24 = arith.constant 0 : index
    %42 = vector.load %arg2[%c0_23, %c0_24] : memref<2x1024xf32, #tpu.memory_space<vmem>>, vector<2x1024xf32>
    %43 = arith.mulf %41, %42 : vector<2x1024xf32>
    %cst_25 = arith.constant dense<0.000000e+00> : vector<2xf32>
    %44 = vector.multi_reduction <add>, %43, %cst_25 [1] : vector<2x1024xf32> to vector<2xf32>
    %45 = vector.shape_cast %44 : vector<2xf32> to vector<2x1xf32>
    %46 = math.rsqrt %45 : vector<2x1xf32>
    %47 = vector.broadcast %46 : vector<2x1xf32> to vector<2x16xf32>
    %48 = arith.mulf %13, %47 : vector<2x16xf32>
    %49 = arith.mulf %22, %48 : vector<2x16xf32>
    %cst_26 = arith.constant dense<0.000000e+00> : vector<2xf32>
    %50 = vector.multi_reduction <add>, %49, %cst_26 [1] : vector<2x16xf32> to vector<2xf32>
    %51 = vector.shape_cast %50 : vector<2xf32> to vector<2x1xf32>
    %52 = arith.mulf %51, %51 : vector<2x1xf32>
    %53 = arith.mulf %22, %48 : vector<2x16xf32>
    %54 = arith.mulf %53, %48 : vector<2x16xf32>
    %cst_27 = arith.constant dense<0.000000e+00> : vector<2xf32>
    %55 = vector.multi_reduction <add>, %54, %cst_27 [1] : vector<2x16xf32> to vector<2xf32>
    %56 = vector.shape_cast %55 : vector<2xf32> to vector<2x1xf32>
    %57 = arith.subf %52, %56 : vector<2x1xf32>
    %cst_28 = arith.constant dense<0.000000e+00> : vector<1xf32>
    %58 = vector.multi_reduction <add>, %57, %cst_28 [0] : vector<2x1xf32> to vector<1xf32>
    %59 = vector.shape_cast %58 : vector<1xf32> to vector<1x1xf32>
    %cst_29 = arith.constant 5.000000e-01 : f32
    %60 = vector.broadcast %cst_29 : f32 to vector<1x1xf32>
    %61 = arith.mulf %59, %60 : vector<1x1xf32>
    %cst_30 = arith.constant 2.000000e+00 : f32
    %62 = vector.broadcast %cst_30 : f32 to vector<1x1xf32>
    %63 = arith.mulf %62, %61 : vector<1x1xf32>
    %64 = arith.addf %40, %63 : vector<1x1xf32>
    %c0_31 = arith.constant 0 : index
    %c0_32 = arith.constant 0 : index
    %65 = vector.load %arg5[%c0_31, %c0_32] : memref<1x1xf32, #tpu.memory_space<vmem>>, vector<1x1xf32>
    tpu.vector_store %arg5[%c0_31, %c0_32], %64 {strides = array<i32>} : memref<1x1xf32, #tpu.memory_space<vmem>>, vector<1x1xf32>,
    return
  }
}

</mosaic_0001>

<bundles_post_ra>
// kernel: dcg_loss_pallas.1
= control target key start
LH: loop header
LB: loop body
LE: loop exit
PB: predicated region body
PF: predicated region fallthrough
CT: control target
= control target key end

     0   :  { %v1101_v7 = vmov 0   ;;  %s1599_s0 = inlined_call_operand.vmem [shape: s32[2,1], index: 0, kind: input, shape index: {}]   ;;  %s1600_s1 = inlined_call_operand.vmem [shape: f32[2,1024], index: 1, kind: input, shape index: {}]   ;;  %s1601_s2 = inlined_call_operand.vmem [shape: f32[2,1024], index: 2, kind: input, shape index: {}]   ;;  %s1602_s3 = inlined_call_operand.vmem [shape: f32[1024,16], index: 3, kind: input, shape index: {}]   ;;  %s1603_s4 = inlined_call_operand.vmem [shape: f32[17,16], index: 4, kind: input, shape index: {}]   ;;  %s1604_s5 = inlined_call_operand.hbm [shape: f32[1,1], index: 5, kind: output, shape index: {}]  }
   0x1   :  { %v128_v0 = vld [vmem:[%s1602_s3 + $0x80] sm:$0xff]  ;;  %v129_v1 = vld [vmem:[%s1602_s3 + $0x88] sm:$0xff]  ;;  %1061 = vset.pattern.permute.xlu1 %v1101_v7  ;;  %1062 = vset.pattern.permute.xlu0 %v1101_v7  ;;  %v130_v12 = vld [vmem:[%s1602_s3 + $0x90] sm:$0xff] }
   0x2   :  { %v160_v2 = vld [vmem:[%s1602_s3 + $0x180] sm:$0xff]  ;;  %v924_v3 = vpack.c.bf16 %v129_v1, %v128_v0  ;;  %v161_v4 = vld [vmem:[%s1602_s3 + $0x188] sm:$0xff]  ;;  %v131_v14 = vld [vmem:[%s1602_s3 + $0x98] sm:$0xff] }
   0x3   :  { %v112_v5 = vld [vmem:[%s1602_s3] sm:$0xff]  ;;  %v113_v6 = vld [vmem:[%s1602_s3 + $0x8] sm:$0xff]  ;;  %v956_v8 = vpack.c.bf16 %v161_v4, %v160_v2  ;;  %v162_v15 = vld [vmem:[%s1602_s3 + $0x190] sm:$0xff]  ;;  %v928_v17 = vpack.c.bf16 %v131_v14, %v130_v12 }
   0x4   :  { %v926_v9 = vpack.c.bf16 %v113_v6, %v112_v5  ;;  %v144_v10 = vld [vmem:[%s1602_s3 + $0x100] sm:$0xff]  ;;  %v145_v11 = vld [vmem:[%s1602_s3 + $0x108] sm:$0xff]  ;;  %925 = vmatprep.subr.bf16.mxu0 %v924_v3  ;;  %v163_v16 = vld [vmem:[%s1602_s3 + $0x198] sm:$0xff] }
   0x5   :  { %v958_v13 = vpack.c.bf16 %v145_v11, %v144_v10  ;;  %957 = vmatprep.subr.bf16.mxu1 %v956_v8  ;;  %v960_v18 = vpack.c.bf16 %v163_v16, %v162_v15  ;;  %v114_v19 = vld [vmem:[%s1602_s3 + $0x10] sm:$0xff]  ;;  %v115_v20 = vld [vmem:[%s1602_s3 + $0x18] sm:$0xff]  ;;  %v132_v24 = vld [vmem:[%s1602_s3 + $0xa0] sm:$0xff] }
   0x6   :  { %927 = vmatpush3.bf16.msra.mxu0 %v926_v9  ;;  %v146_v21 = vld [vmem:[%s1602_s3 + $0x110] sm:$0xff]  ;;  %v930_v22 = vpack.c.bf16 %v115_v20, %v114_v19  ;;  %v147_v23 = vld [vmem:[%s1602_s3 + $0x118] sm:$0xff]  ;;  %v133_v25 = vld [vmem:[%s1602_s3 + $0xa8] sm:$0xff] }
   0x7   :  { %959 = vmatpush3.bf16.msra.mxu1 %v958_v13  ;;  %929 = vmatprep.subr.bf16.mxu0 %v928_v17  ;;  %v962_v26 = vpack.c.bf16 %v147_v23, %v146_v21  ;;  %v932_v27 = vpack.c.bf16 %v133_v25, %v132_v24  ;;  %v164_v28 = vld [vmem:[%s1602_s3 + $0x1a0] sm:$0xff]  ;;  %v165_v29 = vld [vmem:[%s1602_s3 + $0x1a8] sm:$0xff]  ;;  %v134_v36 = vld [vmem:[%s1602_s3 + $0xb0] sm:$0xff] }
   0x8   :  { %961 = vmatprep.subr.bf16.mxu1 %v960_v18  ;;  %v116_v30 = vld [vmem:[%s1602_s3 + $0x20] sm:$0xff]  ;;  %v964_v31 = vpack.c.bf16 %v165_v29, %v164_v28  ;;  %v117_v32 = vld [vmem:[%s1602_s3 + $0x28] sm:$0xff]  ;;  %v135_v37 = vld [vmem:[%s1602_s3 + $0xb8] sm:$0xff] }
   0x9   :  { %v148_v33 = vld [vmem:[%s1602_s3 + $0x120] sm:$0xff]  ;;  %v149_v34 = vld [vmem:[%s1602_s3 + $0x128] sm:$0xff]  ;;  %v934_v35 = vpack.c.bf16 %v117_v32, %v116_v30  ;;  %v166_v38 = vld [vmem:[%s1602_s3 + $0x1b0] sm:$0xff]  ;;  %v936_v40 = vpack.c.bf16 %v135_v37, %v134_v36 }
   0xa   :  { %931 = vmatpush3.bf16.msra.mxu0 %v930_v22  ;;  %v966_v39 = vpack.c.bf16 %v149_v34, %v148_v33  ;;  %v167_v41 = vld [vmem:[%s1602_s3 + $0x1b8] sm:$0xff]  ;;  %v118_v42 = vld [vmem:[%s1602_s3 + $0x30] sm:$0xff]  ;;  %v136_v47 = vld [vmem:[%s1602_s3 + $0xc0] sm:$0xff] }
   0xb   :  { %963 = vmatpush3.bf16.msra.mxu1 %v962_v26  ;;  %933 = vmatprep.subr.bf16.mxu0 %v932_v27  ;;  %v119_v43 = vld [vmem:[%s1602_s3 + $0x38] sm:$0xff]  ;;  %v968_v44 = vpack.c.bf16 %v167_v41, %v166_v38  ;;  %v150_v45 = vld [vmem:[%s1602_s3 + $0x130] sm:$0xff]  ;;  %v137_v48 = vld [vmem:[%s1602_s3 + $0xc8] sm:$0xff] }
   0xc   :  { %965 = vmatprep.subr.bf16.mxu1 %v964_v31  ;;  %v151_v46 = vld [vmem:[%s1602_s3 + $0x138] sm:$0xff]  ;;  %v168_v49 = vld [vmem:[%s1602_s3 + $0x1c0] sm:$0xff]  ;;  %v169_v50 = vld [vmem:[%s1602_s3 + $0x1c8] sm:$0xff]  ;;  %v938_v51 = vpack.c.bf16 %v119_v43, %v118_v42  ;;  %v940_v53 = vpack.c.bf16 %v137_v48, %v136_v47 }
   0xd   :  { %v970_v52 = vpack.c.bf16 %v151_v46, %v150_v45  ;;  %v120_v54 = vld [vmem:[%s1602_s3 + $0x40] sm:$0xff]  ;;  %v121_v55 = vld [vmem:[%s1602_s3 + $0x48] sm:$0xff]  ;;  %v972_v57 = vpack.c.bf16 %v169_v50, %v168_v49  ;;  %v138_v59 = vld [vmem:[%s1602_s3 + $0xd0] sm:$0xff] }
   0xe   :  { %935 = vmatpush3.bf16.msra.mxu0 %v934_v35  ;;  %v152_v56 = vld [vmem:[%s1602_s3 + $0x140] sm:$0xff]  ;;  %v153_v58 = vld [vmem:[%s1602_s3 + $0x148] sm:$0xff]  ;;  %v139_v60 = vld [vmem:[%s1602_s3 + $0xd8] sm:$0xff]  ;;  %v942_v63 = vpack.c.bf16 %v121_v55, %v120_v54  ;;  %v1102_v54 = vmov 1983009808  }
   0xf   :  { %967 = vmatpush3.bf16.msra.mxu1 %v966_v39  ;;  %937 = vmatprep.subr.bf16.mxu0 %v936_v40  ;;  %v170_v61 = vld [vmem:[%s1602_s3 + $0x1d0] sm:$0xff]  ;;  %v171_v62 = vld [vmem:[%s1602_s3 + $0x1d8] sm:$0xff]  ;;  %v974_v0 = vpack.c.bf16 %v153_v58, %v152_v56  ;;  %v944_v1 = vpack.c.bf16 %v139_v60, %v138_v59  ;;  %v140_v7 = vld [vmem:[%s1602_s3 + $0xe0] sm:$0xff]  ;;  %v662_v55 = vunpack.c.l.s4 %v1102_v54 }
  0x10   :  { %969 = vmatprep.subr.bf16.mxu1 %v968_v44  ;;  %v122_v2 = vld [vmem:[%s1602_s3 + $0x50] sm:$0xff]  ;;  %v123_v3 = vld [vmem:[%s1602_s3 + $0x58] sm:$0xff]  ;;  %v976_v5 = vpack.c.bf16 %v171_v62, %v170_v61  ;;  %v141_v8 = vld [vmem:[%s1602_s3 + $0xe8] sm:$0xff] }
  0x11   :  { %v154_v4 = vld [vmem:[%s1602_s3 + $0x150] sm:$0xff]  ;;  %v155_v6 = vld [vmem:[%s1602_s3 + $0x158] sm:$0xff]  ;;  %v172_v9 = vld [vmem:[%s1602_s3 + $0x1e0] sm:$0xff]  ;;  %v946_v11 = vpack.c.bf16 %v123_v3, %v122_v2  ;;  %v948_v15 = vpack.c.bf16 %v141_v8, %v140_v7 }
  0x12   :  { %939 = vmatpush3.bf16.msra.mxu0 %v938_v51  ;;  %v173_v10 = vld [vmem:[%s1602_s3 + $0x1e8] sm:$0xff]  ;;  %v124_v12 = vld [vmem:[%s1602_s3 + $0x60] sm:$0xff]  ;;  %v978_v14 = vpack.c.bf16 %v155_v6, %v154_v4  ;;  %v142_v21 = vld [vmem:[%s1602_s3 + $0xf0] sm:$0xff]  ;;  %v663_v6 = vunpack.c.0.s8 %v662_v55 }
  0x13   :  { %971 = vmatpush3.bf16.msra.mxu1 %v970_v52  ;;  %941 = vmatprep.subr.bf16.mxu0 %v940_v53  ;;  %v125_v13 = vld [vmem:[%s1602_s3 + $0x68] sm:$0xff]  ;;  %v156_v16 = vld [vmem:[%s1602_s3 + $0x160] sm:$0xff]  ;;  %v980_v19 = vpack.c.bf16 %v173_v10, %v172_v9  ;;  %v143_v22 = vld [vmem:[%s1602_s3 + $0xf8] sm:$0xff]  ;;  %v549_v53 = vlaneseq }
  0x14   :  { %973 = vmatprep.subr.bf16.mxu1 %v972_v57  ;;  %v24_v17 = vld [vmem:[%s1600_s1] sm:$0xff]  ;;  %v157_v20 = vld [vmem:[%s1602_s3 + $0x168] sm:$0xff]  ;;  %v174_v25 = vld [vmem:[%s1602_s3 + $0x1f0] sm:$0xff]  ;;  %v950_v27 = vpack.c.bf16 %v125_v13, %v124_v12  ;;  %v952_v29 = vpack.c.bf16 %v143_v22, %v142_v21 }
  0x15   :  { %v1308_v18 = vld [vmem:[%s1601_s2] sm:$0xff]  ;;  %763 = vst.sshfl [vmem:[#allocation2] sm:$0xf pattern:$0x76325410] %v24_v17  ;;  %v28_v24 = vcombine.high %v24_v17, %v24_v17  ;;  %v175_v26 = vld [vmem:[%s1602_s3 + $0x1f8] sm:$0xff]  ;;  %v982_v28 = vpack.c.bf16 %v157_v20, %v156_v16 }
  0x16   :  { %943 = vmatpush3.bf16.msra.mxu0 %v942_v63  ;;  %v70_v23 = vcombine.low %v1308_v18, %v1308_v18  ;;  %768 = vst.sshfl [vmem:[#allocation2 + $0x8] sm:$0xf0 pattern:$0x76325410] %v1308_v18  ;;  %v126_v30 = vld [vmem:[%s1602_s3 + $0x70] sm:$0xff]  ;;  %v127_v31 = vld [vmem:[%s1602_s3 + $0x78] sm:$0xff]  ;;  %v984_v33 = vpack.c.bf16 %v175_v26, %v174_v25  ;;  %v1427_v21 = vmul.f32 %v1308_v18, %v1308_v18 }
  0x17   :  { %975 = vmatpush3.bf16.msra.mxu1 %v974_v0  ;;  %945 = vmatprep.subr.bf16.mxu0 %v944_v1  ;;  %764 = vst.sshfl [vmem:[#allocation2 + $0x8] sm:$0xf pattern:$0x76325410] %v28_v24  ;;  %v158_v32 = vld [vmem:[%s1602_s3 + $0x170] sm:$0xff]  ;;  %v159_v34 = vld [vmem:[%s1602_s3 + $0x178] sm:$0xff]  ;;  %v954_v37 = vpack.c.bf16 %v127_v31, %v126_v30 }
  0x18   :  { %977 = vmatprep.subr.bf16.mxu1 %v976_v5  ;;  %767 = vst.sshfl [vmem:[#allocation2] sm:$0xf0 pattern:$0x76325410] %v70_v23  ;;  %v192_v35 = vld [vmem:[%s1602_s3 + $0x280] sm:$0xff]  ;;  %v193_v36 = vld [vmem:[%s1602_s3 + $0x288] sm:$0xff]  ;;  %v986_v41 = vpack.c.bf16 %v159_v34, %v158_v32 }
  0x19   :  { %v176_v38 = vld [vmem:[%s1602_s3 + $0x200] sm:$0xff]  ;;  %v225_v40 = vld [vmem:[%s1602_s3 + $0x388] sm:$0xff]  ;;  %v988_v42 = vpack.c.bf16 %v193_v36, %v192_v35  ;;  %v194_v46 = vld [vmem:[%s1602_s3 + $0x290] sm:$0xff]  ;;  %v665_v7 = vshrl.u32 %v549_v53, 7 }
  0x1a   :  { %947 = vmatpush3.bf16.msra.mxu0 %v946_v11  ;;  %v224_v39 = vld [vmem:[%s1602_s3 + $0x380] sm:$0xff]  ;;  %v177_v43 = vld [vmem:[%s1602_s3 + $0x208] sm:$0xff]  ;;  %v195_v47 = vld [vmem:[%s1602_s3 + $0x298] sm:$0xff] }
  0x1b   :  { %979 = vmatpush3.bf16.msra.mxu1 %v978_v14  ;;  %949 = vmatprep.subr.bf16.mxu0 %v948_v15  ;;  %v208_v44 = vld [vmem:[%s1602_s3 + $0x300] sm:$0xff]  ;;  %v209_v45 = vld [vmem:[%s1602_s3 + $0x308] sm:$0xff]  ;;  %v226_v48 = vld [vmem:[%s1602_s3 + $0x390] sm:$0xff]  ;;  %v1020_v51 = vpack.c.bf16 %v225_v40, %v224_v39  ;;  %v990_v58 = vpack.c.bf16 %v177_v43, %v176_v38  ;;  %v992_v60 = vpack.c.bf16 %v195_v47, %v194_v46 }
  0x1c   :  { %981 = vmatprep.subr.bf16.mxu1 %v980_v19  ;;  %v227_v52 = vld [vmem:[%s1602_s3 + $0x398] sm:$0xff]  ;;  %v1022_v59 = vpack.c.bf16 %v209_v45, %v208_v44  ;;  %v178_v61 = vld [vmem:[%s1602_s3 + $0x210] sm:$0xff]  ;;  %v196_v2 = vld [vmem:[%s1602_s3 + $0x2a0] sm:$0xff]  ;;  %v1429_v22 = vsub.s32 %v663_v6, %v665_v7 }
  0x1d   :  { %v179_v62 = vld [vmem:[%s1602_s3 + $0x218] sm:$0xff]  ;;  %v210_v63 = vld [vmem:[%s1602_s3 + $0x310] sm:$0xff]  ;;  %v1024_v0 = vpack.c.bf16 %v227_v52, %v226_v48  ;;  %v197_v3 = vld [vmem:[%s1602_s3 + $0x2a8] sm:$0xff] }
  0x1e   :  { %951 = vmatpush3.bf16.msra.mxu0 %v950_v27  ;;  %v109_v50 = vld [vmem:[#allocation2 + $0x8] sm:$0xff]  ;;  %v211_v1 = vld [vmem:[%s1602_s3 + $0x318] sm:$0xff]  ;;  %v228_v4 = vld [vmem:[%s1602_s3 + $0x3a0] sm:$0xff]  ;;  %v994_v8 = vpack.c.bf16 %v179_v62, %v178_v61  ;;  %v996_v10 = vpack.c.bf16 %v197_v3, %v196_v2  ;;  %v667_v35 = vrot.slane %v1427_v21, %v1429_v22 }
  0x1f   :  { %983 = vmatpush3.bf16.msra.mxu1 %v982_v28  ;;  %953 = vmatprep.subr.bf16.mxu0 %v952_v29  ;;  %v108_v49 = vld [vmem:[#allocation2] sm:$0xff]  ;;  %v245_v57 = vcombine.high %v109_v50, %v109_v50  ;;  %v229_v5 = vld [vmem:[%s1602_s3 + $0x3a8] sm:$0xff]  ;;  %v1026_v9 = vpack.c.bf16 %v211_v1, %v210_v63  ;;  %v198_v16 = vld [vmem:[%s1602_s3 + $0x2b0] sm:$0xff] }
  0x20   :  { %985 = vmatprep.subr.bf16.mxu1 %v984_v33  ;;  %v244_v56 = vcombine.high %v108_v49, %v108_v49  ;;  %v180_v11 = vld [vmem:[%s1602_s3 + $0x220] sm:$0xff]  ;;  %v181_v12 = vld [vmem:[%s1602_s3 + $0x228] sm:$0xff]  ;;  %v1028_v14 = vpack.c.bf16 %v229_v5, %v228_v4  ;;  %v199_v17 = vld [vmem:[%s1602_s3 + $0x2b8] sm:$0xff] }
  0x21   :  { %386 = vmatprep.mubr.f32.mxu1 %v245_v57  ;;  %v212_v13 = vld [vmem:[%s1602_s3 + $0x320] sm:$0xff]  ;;  %v213_v15 = vld [vmem:[%s1602_s3 + $0x328] sm:$0xff]  ;;  %v230_v19 = vld [vmem:[%s1602_s3 + $0x3b0] sm:$0xff]  ;;  %v998_v23 = vpack.c.bf16 %v181_v12, %v180_v11  ;;  %v1000_v26 = vpack.c.bf16 %v199_v17, %v198_v16 }
  0x22   :  { %955 = vmatpush3.bf16.msra.mxu0 %v954_v37  ;;  %316 = vmatprep.mubr.f32.mxu0 %v244_v56  ;;  %v231_v20 = vld [vmem:[%s1602_s3 + $0x3b8] sm:$0xff]  ;;  %v182_v24 = vld [vmem:[%s1602_s3 + $0x230] sm:$0xff]  ;;  %v1030_v25 = vpack.c.bf16 %v213_v15, %v212_v13  ;;  %v200_v30 = vld [vmem:[%s1602_s3 + $0x2c0] sm:$0xff] }
  0x23   :  { %987 = vmatpush3.bf16.msra.mxu1 %v986_v41  ;;  %989 = vmatprep.subr.bf16.mxu0 %v988_v42  ;;  %v183_v27 = vld [vmem:[%s1602_s3 + $0x238] sm:$0xff]  ;;  %v214_v18 = vld [vmem:[%s1602_s3 + $0x330] sm:$0xff]  ;;  %v1032_v29 = vpack.c.bf16 %v231_v20, %v230_v19  ;;  %v201_v31 = vld [vmem:[%s1602_s3 + $0x2c8] sm:$0xff] }
  0x24   :  { %1021 = vmatprep.subr.bf16.mxu1 %v1020_v51  ;;  %v215_v28 = vld [vmem:[%s1602_s3 + $0x338] sm:$0xff]  ;;  %v184_v32 = vld [vmem:[%s1602_s3 + $0x240] sm:$0xff]  ;;  %v233_v34 = vld [vmem:[%s1602_s3 + $0x3c8] sm:$0xff]  ;;  %v1002_v36 = vpack.c.bf16 %v183_v27, %v182_v24  ;;  %v1004_v41 = vpack.c.bf16 %v201_v31, %v200_v30 }
  0x25   :  { %317 = vmatmul.mubr.f32.vlgmr.msra.gmra.mrb[0].mxu0 %v108_v49  ;;  %v232_v33 = vld [vmem:[%s1602_s3 + $0x3c0] sm:$0xff]  ;;  %v1034_v37 = vpack.c.bf16 %v215_v28, %v214_v18  ;;  %v25_v38 = vld [vmem:[%s1600_s1 + $0x8] sm:$0xff] }
  0x26   :  { %387 = vmatmul.mubr.f32.vlgmr.msra.gmra.mrb[0].mxu1 %v109_v50  ;;  %991 = vmatpush3.bf16.msra.mxu0 %v990_v58  ;;  %v1466_v39 = vld [vmem:[%s1601_s2 + $0x8] sm:$0xff]  ;;  %v551_v40 = vld [vmem:[%s1599_s0] sm:$0x3]  ;;  %v43_v45 = vcombine.high %v25_v38, %v25_v38 }
  0x27   :  { %1023 = vmatpush3.bf16.msra.mxu1 %v1022_v59  ;;  %993 = vmatprep.subr.bf16.mxu0 %v992_v60  ;;  %v185_v42 = vld [vmem:[%s1602_s3 + $0x248] sm:$0xff]  ;;  %v216_v43 = vld [vmem:[%s1602_s3 + $0x340] sm:$0xff]  ;;  %765 = vst.sshfl [vmem:[#allocation2 + $0x10] sm:$0xf pattern:$0x76325410] %v25_v38  ;;  %v85_v44 = vcombine.low %v1466_v39, %v1466_v39 }
  0x28   :  { %1025 = vmatprep.subr.bf16.mxu1 %v1024_v0  ;;  %770 = vst.sshfl [vmem:[#allocation2 + $0x18] sm:$0xf0 pattern:$0x76325410] %v1466_v39 }
  0x2a   :  { %995 = vmatpush3.bf16.msra.mxu0 %v994_v8 }
  0x2b   :  { %1027 = vmatpush3.bf16.msra.mxu1 %v1026_v9  ;;  %997 = vmatprep.subr.bf16.mxu0 %v996_v10 }
  0x2c   :  { %1029 = vmatprep.subr.bf16.mxu1 %v1028_v14 }
  0x2e   :  { %999 = vmatpush3.bf16.msra.mxu0 %v998_v23 }
  0x2f   :  { %1031 = vmatpush3.bf16.msra.mxu1 %v1030_v25  ;;  %1001 = vmatprep.subr.bf16.mxu0 %v1000_v26 }
  0x30   :  { %10 = vsyncpa [#allocation4], 0  ;;  %1033 = vmatprep.subr.bf16.mxu1 %v1032_v29  ;;  %v1036_v46 = vpack.c.bf16 %v233_v34, %v232_v33  ;;  %v217_v47 = vld [vmem:[%s1602_s3 + $0x348] sm:$0xff]  ;;  %v202_v48 = vld [vmem:[%s1602_s3 + $0x2d0] sm:$0xff]  ;;  %553 = vperm.xlu1 %1061, %v551_v40   ;;  %v660_v50 = vcombine.high %v1427_v21, %v1427_v21  ;;  %v675_v54 = vcombine.high %v667_v35, %v667_v35  ;;  %vm645_vm0 = vcmask 1041408  }
  0x31   :  { %v203_v49 = vld [vmem:[%s1602_s3 + $0x2d8] sm:$0xff]  ;;  %v234_v51 = vld [vmem:[%s1602_s3 + $0x3d0] sm:$0xff]  ;;  %769 = vst.sshfl [vmem:[#allocation2 + $0x10] sm:$0xf0 pattern:$0x76325410] %v85_v44  ;;  %v1006_v55 = vpack.c.bf16 %v185_v42, %v184_v32  ;;  %v1038_v56 = vpack.c.bf16 %v217_v47, %v216_v43  ;;  %v657_v26 = vmul.f32 %v1466_v39, %v1466_v39 }
  0x32   :  { %v235_v52 = vld [vmem:[%s1602_s3 + $0x3d8] sm:$0xff]  ;;  %766 = vst.sshfl [vmem:[#allocation2 + $0x18] sm:$0xf pattern:$0x76325410] %v43_v45  ;;  %1003 = vmatpush3.bf16.msra.mxu0 %v1002_v36  ;;  %v1008_v57 = vpack.c.bf16 %v203_v49, %v202_v48  ;;  %v186_v58 = vld [vmem:[%s1602_s3 + $0x250] sm:$0xff]  ;;  %v674_v1 = vrot.slane %v660_v50, %v1429_v22 }
  0x33   :  { %1035 = vmatpush3.bf16.msra.mxu1 %v1034_v37  ;;  %1005 = vmatprep.subr.bf16.mxu0 %v1004_v41  ;;  %v187_v59 = vld [vmem:[%s1602_s3 + $0x258] sm:$0xff]  ;;  %v218_v60 = vld [vmem:[%s1602_s3 + $0x350] sm:$0xff]  ;;  %v1040_v61 = vpack.c.bf16 %v235_v52, %v234_v51  ;;  %v204_v63 = vld [vmem:[%s1602_s3 + $0x2e0] sm:$0xff]  ;;  %v702_v4 = vsel %vm645_vm0, %v667_v35, 0.0  ;;  %v703_v5 = vsel %vm645_vm0, %v675_v54, 0.0  ;;  %v684_v36 = vrot.slane %v657_v26, %v1429_v22 }
  0x34   :  { %1037 = vmatprep.subr.bf16.mxu1 %v1036_v46  ;;  %v219_v62 = vld [vmem:[%s1602_s3 + $0x358] sm:$0xff]  ;;  %v205_v0 = vld [vmem:[%s1602_s3 + $0x2e8] sm:$0xff]  ;;  %v236_v2 = vld [vmem:[%s1602_s3 + $0x3e0] sm:$0xff]  ;;  %v1010_v6 = vpack.c.bf16 %v187_v59, %v186_v58  ;;  %v676_v19 = vcombine.high %v674_v1, %v674_v1  ;;  %v704_v20 = vadd.f32 %v703_v5, %v702_v4  ;;  %v705_v27 = vsel %vm645_vm0, %v674_v1, 0.0 }
  0x35   :  { %v237_v3 = vld [vmem:[%s1602_s3 + $0x3e8] sm:$0xff]  ;;  %v188_v7 = vld [vmem:[%s1602_s3 + $0x260] sm:$0xff]  ;;  %v1042_v9 = vpack.c.bf16 %v219_v62, %v218_v60  ;;  %v1012_v10 = vpack.c.bf16 %v205_v0, %v204_v63  ;;  %v206_v13 = vld [vmem:[%s1602_s3 + $0x2f0] sm:$0xff]  ;;  %v677_v41 = vcombine.high %v657_v26, %v657_v26  ;;  %v692_v42 = vcombine.high %v684_v36, %v684_v36 }
  0x36   :  { %1007 = vmatpush3.bf16.msra.mxu0 %v1006_v55  ;;  %v189_v8 = vld [vmem:[%s1602_s3 + $0x268] sm:$0xff]  ;;  %v220_v11 = vld [vmem:[%s1602_s3 + $0x360] sm:$0xff]  ;;  %v1044_v14 = vpack.c.bf16 %v237_v3, %v236_v2  ;;  %v207_v15 = vld [vmem:[%s1602_s3 + $0x2f8] sm:$0xff]  ;;  %v706_v35 = vadd.f32 %v705_v27, %v704_v20  ;;  %v707_v37 = vsel %vm645_vm0, %v676_v19, 0.0  ;;  %v709_v43 = vsel %vm645_vm0, %v684_v36, 0.0 }
  0x37   :  { %1039 = vmatpush3.bf16.msra.mxu1 %v1038_v56  ;;  %1009 = vmatprep.subr.bf16.mxu0 %v1008_v57  ;;  %v221_v12 = vld [vmem:[%s1602_s3 + $0x368] sm:$0xff]  ;;  %v238_v21 = vld [vmem:[%s1602_s3 + $0x3f0] sm:$0xff]  ;;  %v239_v23 = vld [vmem:[%s1602_s3 + $0x3f8] sm:$0xff]  ;;  %v1014_v18 = vpack.c.bf16 %v189_v8, %v188_v7  ;;  %v1016_v29 = vpack.c.bf16 %v207_v15, %v206_v13  ;;  %v691_v45 = vrot.slane %v677_v41, %v1429_v22  ;;  %v711_v46 = vsel %vm645_vm0, %v692_v42, 0.0 }
  0x38   :  { %1041 = vmatprep.subr.bf16.mxu1 %v1040_v61  ;;  %v110_v16 = vld [vmem:[#allocation2 + $0x10] sm:$0xff]  ;;  %v1046_v28 = vpack.c.bf16 %v221_v12, %v220_v11  ;;  %v191_v31 = vld [vmem:[%s1602_s3 + $0x278] sm:$0xff]  ;;  %v1048_v32 = vpack.c.bf16 %v239_v23, %v238_v21  ;;  %v708_v40 = vadd.f32 %v707_v37, %v706_v35  ;;  %vm537_vm1 = vcmask 123904   ;;  %v21_v12 = vld [vmem:[%s1603_s4] sm:$0xff] }
  0x39   :  { %v111_v17 = vld [vmem:[#allocation2 + $0x18] sm:$0xff]  ;;  %v246_v24 = vcombine.high %v110_v16, %v110_v16  ;;  %v190_v30 = vld [vmem:[%s1602_s3 + $0x270] sm:$0xff]  ;;  %v693_v48 = vcombine.high %v691_v45, %v691_v45  ;;  %v713_v49 = vsel %vm645_vm0, %v691_v45, 0.0  ;;  %v22_v13 = vld [vmem:[%s1603_s4 + $0x8] sm:$0xff]  ;;  %v1103_v15 = vmov 0.0|0.0  }
  0x3a   :  { %v247_v25 = vcombine.high %v111_v17, %v111_v17  ;;  %1011 = vmatpush3.bf16.msra.mxu0 %v1010_v6  ;;  %v222_v33 = vld [vmem:[%s1602_s3 + $0x370] sm:$0xff]  ;;  %v223_v34 = vld [vmem:[%s1602_s3 + $0x378] sm:$0xff]  ;;  %v1018_v38 = vpack.c.bf16 %v191_v31, %v190_v30  ;;  %v710_v44 = vadd.f32 %v709_v43, %v708_v40  ;;  %vm1104_vm2 = vmmov 0  }
  0x3b   :  { %1043 = vmatpush3.bf16.msra.mxu1 %v1042_v9  ;;  %1013 = vmatprep.subr.bf16.mxu0 %v1012_v10  ;;  %v1050_v39 = vpack.c.bf16 %v223_v34, %v222_v33  ;;  %v715_v51 = vsel %vm645_vm0, %v693_v48, 0.0  ;;  %v771_v3 = vld [vmem:[%s1603_s4 + $0x10] ss:$0 sm:$0xff]  ;;  %v550_v23 = vand.u32 127, %v549_v53  ;;  %vm559_vm4 = vcmask 130048   ;;  %s1106_s4 = smov [#allocation3]  }
  0x3c   :  { %1045 = vmatprep.subr.bf16.mxu1 %v1044_v14  ;;  %456 = vmatprep.mubr.f32.mxu0 %v246_v24  ;;  %v712_v47 = vadd.f32 %v711_v46, %v710_v44  ;;  %v1053_v14 = vpack.c.bf16 %v22_v13, %v21_v12  ;;  %s755_s8 = sshll.u32 %s1106_s4, 4  ;;  %vm747_vm7 = vcmask 0   ;;  %s756_s8 = int_to_ptr.vmem [resolvable:$true] %s755_s8 }
  0x3d   :  { %526 = vmatprep.mubr.f32.mxu1 %v247_v25  ;;  %s1077_s0 = scalar_lea.vmem %s756_s8, 16  ;;  %s1081_s1 = scalar_lea.vmem %s756_s8, 32 }
  0x3e   :  { %1015 = vmatpush3.bf16.msra.mxu0 %v1014_v18  ;;  %v714_v50 = vadd.f32 %v713_v49, %v712_v47  ;;  %p1078_p0 = scmp.ne.s32.totalorder %s756_s8, %s1077_s0  ;;  %p1082_p1 = scmp.lt.s32.totalorder %s756_s8, %s756_s8 }
  0x3f   :  { %1047 = vmatpush3.bf16.msra.mxu1 %v1046_v28  ;;  %1017 = vmatprep.subr.bf16.mxu0 %v1016_v29  ;;  %p1083_p2 = scmp.lt.s32.totalorder %s1081_s1, %s1077_s0 }
  0x40   :  { %1049 = vmatprep.subr.bf16.mxu1 %v1048_v32  ;;  %v716_v52 = vadd.f32 %v715_v51, %v714_v50 }
  0x41   :  { %p1084_p3 = por %p1083_p2, %p1082_p1 }
  0x42   :  { %1019 = vmatpush3.bf16.msra.mxu0 %v1018_v38 }
  0x43   :  { %1051 = vmatpush3.bf16.msra.mxu1 %v1050_v39  ;;  %1052 = vmatprep.subr.bf16.mxu0 %v1103_v15  ;;  %p1085_p4 = pnand %p1084_p3, %p1078_p0 }
  0x45   :  { %457 = vmatmul.mubr.f32.vlgmr.msra.gmra.mrb[2].mxu0 %v110_v16  ;;  %v1105_v16 = vmov 0.0  }
  0x46   :  { %527 = vmatmul.mubr.f32.vlgmr.msra.gmra.mrb[2].mxu1 %v111_v17  ;;  %921 = vmatprep.mubr.msk.f32.mxu0 %vm1104_vm2, %v1105_v16 }
  0x47   :  { %1054 = vmatpush3.bf16.msra.mxu0 %v1053_v14 }
  0x54   :  { %717 = vadd.xlane.f32.xlu1 %v716_v52 }
  0xaf   :  { %v554_v17 = vpop.permute.xlu1 %553 }
  0xb0   :  { %vm555_vm3 = vcmp.eq.s32.totalorder %v550_v23, %v554_v17 }
  0xb1   :  { %v772_v27 = vsel %vm555_vm3, 1.0, %v1105_v16 }
  0xe1   :  { %v718_v19 = vpop.xlane.xlu1 %717 }
  0xf8   :  { %v806_v54 = vpop.f32.mrb[0].mxu0 }
  0xf9   :  { %v841_v55 = vpop.f32.mrb[0].mxu1  ;;  %v807_v56 = vpop.f32.mrb[1].mxu0 }
  0xfa   :  { %v808_v57 = vadd.f32 %v807_v56, %v806_v54  ;;  %v842_v58 = vpop.f32.mrb[1].mxu1 }
  0xfb   :  { %v843_v59 = vadd.f32 %v842_v58, %v841_v55 }
  0xfd   :  { %v389_v60 = vadd.f32 %v843_v59, %v808_v57 }
 0x118   :  { %v876_v22 = vpop.f32.mrb[2].mxu0 }
 0x119   :  { %v877_v61 = vpop.f32.mrb[3].mxu0  ;;  %v911_v62 = vpop.f32.mrb[2].mxu1 }
 0x11a   :  { %v878_v63 = vadd.f32 %v877_v61, %v876_v22  ;;  %v912_v0 = vpop.f32.mrb[3].mxu1 }
 0x11b   :  { %v913_v1 = vadd.f32 %v912_v0, %v911_v62 }
 0x11c   :  { %v459_v2 = vadd.f32 %v878_v63, %v389_v60 }
 0x11e   :  { %v529_v4 = vadd.f32 %v913_v1, %v459_v2 }
 0x120   :  { %v536_v5 = vadd.f32 %v771_v3, %v529_v4 }
 0x122   :  { %v538_v6 = vsel %vm537_vm1, %v536_v5, -inf }
 0x123   :  { %539 = vmax.xlane.f32.xlu0 %v538_v6 }
 0x1b0   :  { %v540_v7 = vpop.xlane.xlu0 %539 }
 0x1b1   :  { %v541_v8 = vsub.f32 %v536_v5, %v540_v7 }
 0x1b3   :  { %v542_v9 = vmul.f32 1.442695, %v541_v8 }
 0x1b5   :  { %1069 = vpow2.f32 %v542_v9 }
 0x1b6   :  { %1071 = vrsqrt.f32 %v718_v19 }
 0x1bf   :  { %v1070_v10 = vpop.eup %1069 }
 0x1c0   :  { %v544_v11 = vsel %vm537_vm1, %v1070_v10, 0.0  ;;  %v1072_v21 = vpop.eup %1071 }
 0x1c1   :  { %545 = vadd.xlane.f32.xlu0 %v544_v11  ;;  %v721_v24 = vrot.slane %v1072_v21, 6 }
 0x1c3   :  { %v723_v25 = vmul.f32 %v721_v24, %v529_v4 }
 0x1c5   :  { %v725_v28 = vrot.slane %v723_v25, 2 }
 0x24e   :  { %v546_v20 = vpop.xlane.xlu0 %545 }
 0x24f   :  { %1073 = vrcp.f32 %v546_v20 }
 0x259   :  { %v1074_v26 = vpop.eup %1073 }
 0x25a   :  { %v548_v18 = vmul.f32 %v1074_v26, %v1070_v10 }
 0x25c   :  { %v558_v29 = vsub.f32 %v772_v27, %v548_v18  ;;  %v727_v30 = vmul.f32 %v725_v28, %v548_v18 }
 0x25e   :  { %922 = vmatmul.mubr.msk.f32.vlgmr.msra.gmra.mrb[4].mxu0 %vm559_vm4, %v558_v29  ;;  %v732_v31 = vmul.f32 %v727_v30, %v725_v28  ;;  %v728_v53 = vsel %vm537_vm1, %v727_v30, 0.0 }
 0x260   :  { %v733_v36 = vsel %vm537_vm1, %v732_v31, 0.0 }
 0x331   :  { %v629_v32 = vpop.f32.mrb[4].mxu0 }
 0x332   :  { %v633_v33 = vmul.f32 %v629_v32, %v558_v29  ;;  %v923_v34 = vpop.f32.mrb[5].mxu0 }
 0x334   :  { %v634_v35 = vsel %vm537_vm1, %v633_v33, 0.0 }
 0x335   :  { %635 = vadd.xlane.f32.xlu0 %v634_v35 }
 0x339   :  { %729 = vadd.xlane.f32.xlu0 %v728_v53 }
 0x33d   :  { %734 = vadd.xlane.f32.xlu0 %v733_v36 }
 0x3c2   :  { %v636_v37 = vpop.xlane.xlu0 %635 }
 0x3c3   :  { %v637_v38 = vmax.f32 %v636_v37, 0.0 }
 0x3c5   :  { %1075 = vrsqrt.f32 %v637_v38  ;;  %vm640_vm5 = vcmp.eq.f32.partialorder %v637_v38, inf  ;;  %v643_v48 = vand.u32 2147483648, %v637_v38  ;;  %vm642_vm6 = vcmp.eq.f32.partialorder %v637_v38, 0.0 }
 0x3c6   :  { %v730_v39 = vpop.xlane.xlu0 %729 }
 0x3c7   :  { %v731_v40 = vmul.f32 %v730_v39, %v730_v39 }
 0x3ca   :  { %v735_v41 = vpop.xlane.xlu0 %734 }
 0x3cb   :  { %v736_v42 = vsub.f32 %v731_v40, %v735_v41 }
 0x3cd   :  { %v737_v43 = vsel %vm645_vm0, %v736_v42, 0.0 }
 0x3ce   :  { %v738_v44 = vrot.slane %v737_v43, 4 }
 0x3cf   :  { %v1076_v45 = vpop.eup %1075 }
 0x3d0   :  { %v639_v46 = vmul.f32 %v1076_v45, %v637_v38  ;;  %v739_v47 = vadd.f32 %v738_v44, %v737_v43 }
 0x3d2   :  { %v740_v49 = vrot.slane %v739_v47, 2  ;;  %v641_v50 = vsel %vm640_vm5, %v637_v38, %v639_v46 }
 0x3d3   :  { %v644_v51 = vsel %vm642_vm6, %v643_v48, %v641_v50 }
 0x3d4   :  { %v741_v52 = vadd.f32 %v740_v49, %v739_v47  ;;  %v646_v54 = vsel %vm645_vm0, %v644_v51, 0.0 }
 0x3d5   :  { %v647_v55 = vrot.slane %v646_v54, 4 }
 0x3d6   :  { %v742_v56 = vrot.slane %v741_v52, 1 }
 0x3d7   :  { %v648_v57 = vadd.f32 %v647_v55, %v646_v54 }
 0x3d8   :  { %v743_v59 = vadd.f32 %v742_v56, %v741_v52 }
 0x3d9   :  { %v649_v58 = vrot.slane %v648_v57, 2 }
 0x3da   :  { %v744_v61 = vmul.f32 0.5, %v743_v59 }
 0x3db   :  { %v650_v60 = vadd.f32 %v649_v58, %v648_v57 }
 0x3dc   :  { %v745_v0 = vmul.f32 2.0, %v744_v61 }
 0x3dd   :  { %v651_v22 = vrot.slane %v650_v60, 1 }
 0x3df   :  { %v652_v62 = vadd.f32 %v651_v22, %v650_v60 }
 0x3e1   :  { %v653_v63 = vmul.f32 0.5, %v652_v62 }
 0x3e3   :  { %v746_v1 = vadd.f32 %v745_v0, %v653_v63 }
 0x3e5   :  { %748 = vst.msk [vmem:[#allocation3] sm:$0x1] %vm747_vm7, %v746_v1 }
 0x3e6   :  { %1088 = shalt.err (!%p1085_p4)
}
 0x3e7   :  { %s1089_s10 = scalar_lea.hbm %s1604_s5, 16 }
 0x3e8   :  { %p1090_p5 = scmp.ne.s32.totalorder %s1604_s5, %s1089_s10  ;;  %p1093_p6 = scmp.lt.u32.totalorder %s1089_s10, %s1604_s5 }
 0x3ea   :  { %p1095_p7 = pnand %p1093_p6, %p1090_p5 }
 0x3ec   :  { %1098 = shalt.err (!%p1095_p7)
}
 0x3ed   :  { %758 = dma.vmem_to_hbm [thread:$0]  %s756_s8, 16, %s1604_s5, [#allocation4]  }
 0x3ee   :  { %1099 = dma.done.wait [#allocation4], 16  }
 0x3ef   :  { %1100 = vsyncadd [#allocation4], 4294967280 }
 0x3f0   :  { %762 = vsyncpa [#allocation4], 1 }

</bundles_post_ra>
